<compile_context>
chip_gen: v5e
topology: v5e:2x2
jax: 0.10.0
libtpu: 0.0.40
codegen_flags: <defaults>
</compile_context>

<pallas_src>
import functools

import jax
import jax.numpy as jnp
from jax.experimental import pallas as pl
from jax.experimental.pallas import tpu as pltpu


def _round_up(x, m):
    return ((x + m - 1) // m) * m


def _textcnn_kernel(x_ref, wcols_ref, bias_ref, wl_ref, bl_ref, o_ref, *, m3, m4, m5):
    # x_ref:     (TB, K)   flattened sentences (K = S * D)
    # wcols_ref: (K, NW)   packed conv weights: one column per (filter, window)
    # bias_ref:  (1, NW)   conv bias broadcast over each filter's column range
    # wl_ref:    (3, L)    linear weight^T
    # bl_ref:    (1, L)    linear bias
    # o_ref:     (TB, L)
    NW = wcols_ref.shape[1]
    n3, n4, n5 = m3, m3 + m4, m3 + m4 + m5

    # One MXU matmul evaluates every conv window of every filter for the tile.
    y = jnp.dot(x_ref[...], wcols_ref[...], preferred_element_type=jnp.float32)
    y = jnp.maximum(y + bias_ref[...], 0.0)            # bias + ReLU, full lane width

    # Per-filter max-pool over its contiguous range of window columns.  After
    # ReLU every value is >= 0, so zero-filling the other lanes is exact.
    lane = jax.lax.broadcasted_iota(jnp.int32, (1, NW), 1)

    def seg_max(lo, hi):
        seg = jnp.where((lane >= lo) & (lane < hi), y, 0.0)
        return jnp.max(seg, axis=1, keepdims=True)      # (TB, 1)

    f3 = seg_max(0, n3)
    f4 = seg_max(n3, n4)
    f5 = seg_max(n4, n5)

    # Linear(3, L); batch fills sublanes.  Output bytes are negligible, so the
    # narrow (TB, L) store is left as-is (review: acceptable).
    o_ref[...] = (f3 * wl_ref[0:1, :] + f4 * wl_ref[1:2, :] + f5 * wl_ref[2:3, :]
                  + bl_ref[...])


def _pack_window_columns(w3, w4, w5, S, NW):
    """(K, NW) matrix whose column (filter, window i) is that filter shifted to row i."""
    D = w3.shape[1]
    K = S * D
    blocks = []
    for wk in (w3, w4, w5):
        k = wk.shape[0]
        m = S - k + 1
        i_idx = jnp.arange(m)[:, None]                        # (m, 1)
        s_idx = jnp.arange(S)[None, :]                        # (1, S)
        r = s_idx - i_idx                                     # (m, S) filter-row index
        rows = jnp.take(wk, jnp.clip(r, 0, k - 1), axis=0)    # (m, S, D)
        rows = jnp.where(((r >= 0) & (r < k))[..., None], rows, 0.0)
        blocks.append(rows.reshape(m, K))
    wcols = jnp.concatenate(blocks, axis=0)                   # (ncols, K)
    ncols = wcols.shape[0]
    return jnp.pad(wcols, ((0, NW - ncols), (0, 0))).T        # (K, NW)


def _pack_bias(conv_bias, m3, m4, m5, NW):
    b3, b4, b5 = conv_bias.reshape(3)
    seg = jnp.concatenate([jnp.full((m3,), b3, jnp.float32),
                           jnp.full((m4,), b4, jnp.float32),
                           jnp.full((m5,), b5, jnp.float32)])
    return jnp.pad(seg, (0, NW - (m3 + m4 + m5))).reshape(1, NW)


def _pick_batch_tile(B, K, NW):
    """Largest multiple-of-8 divisor of B that fits the per-tile VMEM budget."""
    # Per-batch-row footprint: double-buffered (tb, K) input + ~6 (tb, NW) f32 temps.
    row_bytes = (2 * K + 6 * NW) * 4
    budget = 6 << 20              # keeps tiles well inside v5e's 16 MiB scoped default
    cap = max(8, budget // row_bytes)
    if B >= 32:
        # >= 4 grid steps -> >= 2 steps per TensorCore on v7x, so the BlockSpec
        # double-buffer has something to overlap; on 1-TC chips (v5e/v6e) this
        # only costs a few ~0.35 us per-step overheads.
        cap = min(cap, max(8, B // 4))
    tb, t = None, 8
    while t <= min(B, cap):
        if B % t == 0:
            tb = t
        t += 8
    if tb is None:
        # No usable multiple-of-8 divisor: one full-batch block (block == full
        # dim is always legal) if it fits, else a rare pad-to-8 fallback.
        tb = B if B <= cap else 8
    return tb


def textcnn_forward(x_nchw, w3, w4, w5, conv_bias, wlin_t, blin):
    """x_nchw: (B, 1, S, D) float32 (as in the PyTorch module).  Returns (B, L)."""
    B, C, S, D = x_nchw.shape
    assert C == 1 and S >= 5, "TextCNN expects 1 input channel and sentence_max_size >= 5"
    L = wlin_t.shape[1]
    K = S * D
    m3, m4, m5 = S - 2, S - 3, S - 4
    NW = _round_up(m3 + m4 + m5, 128)

    # Free contiguous reshape — no extra HBM traffic (review: drop the pads).
    x2d = x_nchw.reshape(B, K)

    # Pack weights / bias once (wrapper-side, tiny).  NOTE: the dense window-
    # column matrix is (S*D, NW) and stays resident in VMEM, which is fine for
    # typical TextCNN configs (sentence_max_size <= ~64); very long sentences
    # would need a K-tiled variant instead.
    wcols = _pack_window_columns(w3, w4, w5, S, NW)
    bias_vec = _pack_bias(conv_bias, m3, m4, m5, NW)

    tb = _pick_batch_tile(B, K, NW)
    Bp = _round_up(B, tb)
    if Bp != B:   # only hit when B has no usable multiple-of-8 divisor
        x2d = jnp.pad(x2d, ((0, Bp - B), (0, 0)))

    # VMEM budget: double-buffered activations/outputs + resident weights +
    # (tb, NW) intermediates, plus headroom for compiler temporaries.
    weight_bytes = (K * NW + NW + 3 * L + L) * 4
    tile_bytes = (2 * tb * K + 2 * tb * L + 6 * tb * NW) * 4
    vmem_limit = int(min(48 << 20,
                         max(tile_bytes + 2 * weight_bytes + (4 << 20), 16 << 20)))

    kernel = functools.partial(_textcnn_kernel, m3=m3, m4=m4, m5=m5)
    out = pl.pallas_call(
        kernel,
        out_shape=jax.ShapeDtypeStruct((Bp, L), jnp.float32),
        grid_spec=pltpu.PrefetchScalarGridSpec(
            num_scalar_prefetch=0,
            grid=(Bp // tb,),
            in_specs=[
                pl.BlockSpec((tb, K), lambda b: (b, 0)),    # activations (batch-tiled)
                pl.BlockSpec((K, NW), lambda b: (0, 0)),    # packed conv weights (resident)
                pl.BlockSpec((1, NW), lambda b: (0, 0)),    # packed conv bias (resident)
                pl.BlockSpec((3, L), lambda b: (0, 0)),     # linear weight^T (resident)
                pl.BlockSpec((1, L), lambda b: (0, 0)),     # linear bias (resident)
            ],
            out_specs=pl.BlockSpec((tb, L), lambda b: (b, 0)),
        ),
        compiler_params=pltpu.CompilerParams(
            dimension_semantics=("parallel",),
            vmem_limit_bytes=vmem_limit),
    )(x2d, wcols, bias_vec, wlin_t, blin)
    return out[:B]


def reference_forward(x_nchw, w3, w4, w5, conv_bias, wlin_t, blin):
    """Pure-JAX reference mirroring the PyTorch module (exact f32 math)."""
    x = x_nchw[:, 0]   # (B, S, D)
    B, S, D = x.shape
    feats = []
    for k, w, b in ((3, w3, conv_bias[0, 0]),
                    (4, w4, conv_bias[0, 1]),
                    (5, w5, conv_bias[0, 2])):
        m = S - k + 1
        y = jnp.stack(
            [jnp.sum(x[:, i:i + k, :] * w[None], axis=(1, 2)) for i in range(m)],
            axis=1) + b
        feats.append(jnp.max(jnp.maximum(y, 0.0), axis=1))
    out = (feats[0][:, None] * wlin_t[0][None, :]
           + feats[1][:, None] * wlin_t[1][None, :]
           + feats[2][:, None] * wlin_t[2][None, :]
           + blin[0])
    return out


if __name__ == "__main__":
    # Small config consistent with the module's forward.
    B = 32                     # batch -> 4 grid steps of 8 rows
    S = 8                      # config.sentence_max_size
    D = 32                     # config.word_embedding_dimension
    L = 4                      # config.label_num

    key = jax.random.PRNGKey(0)
    kx, k3, k4, k5, kb, kw, kbl = jax.random.split(key, 7)

    # PyTorch-style NCHW input (B, 1, S, D).
    x = jax.random.normal(kx, (B, 1, S, D), dtype=jnp.float32)

    # Deterministic synthetic parameters (shapes follow nn.Conv2d / nn.Linear).
    w3 = jax.random.normal(k3, (3, D), dtype=jnp.float32) * 0.1    # conv3.weight[0, 0]
    w4 = jax.random.normal(k4, (4, D), dtype=jnp.float32) * 0.1    # conv4.weight[0, 0]
    w5 = jax.random.normal(k5, (5, D), dtype=jnp.float32) * 0.1    # conv5.weight[0, 0]
    conv_bias = jax.random.normal(kb, (1, 3), dtype=jnp.float32) * 0.1   # [b3, b4, b5]
    wlin = jax.random.normal(kw, (L, 3), dtype=jnp.float32) * 0.1  # nn.Linear(3, L).weight
    wlin_t = wlin.T                                                # (3, L)
    blin = (jax.random.normal(kbl, (L,), dtype=jnp.float32) * 0.1).reshape(1, L)

    out = jax.block_until_ready(textcnn_forward(x, w3, w4, w5, conv_bias, wlin_t, blin))
    ref = reference_forward(x, w3, w4, w5, conv_bias, wlin_t, blin)

    assert out.shape == (B, L)
    # Tolerance covers the default (single-pass) MXU precision vs. the exact f32
    # reference; structural errors would be orders of magnitude larger.
    assert jnp.allclose(out, ref, atol=5e-3, rtol=5e-3), (out, ref)

    print("KERNEL_OK")
</pallas_src>

<mosaic_0001>
module attributes {stable_mosaic.version = 11 : i64} {
  func.func @_textcnn_kernel(%arg0: i32, %arg1: memref<8x256xf32, #tpu.memory_space<vmem>>, %arg2: memref<256x128xf32, #tpu.memory_space<vmem>>, %arg3: memref<1x128xf32, #tpu.memory_space<vmem>>, %arg4: memref<3x4xf32, #tpu.memory_space<vmem>>, %arg5: memref<1x4xf32, #tpu.memory_space<vmem>>, %arg6: memref<8x4xf32, #tpu.memory_space<vmem>>) attributes {dimension_semantics = [#tpu.dimension_semantics<parallel>], iteration_bounds = array<i64: 4>, scalar_prefetch = 0 : i64, scratch_operands = 0 : i64, tpu.core_type = #tpu.core_type<tc>, window_params = [{transform_indices = @transform_0, window_bounds = array<i64: 8, 256>}, {pipeline_mode = #tpu.pipeline_mode<synchronous>, transform_indices = @transform_1, window_bounds = array<i64: 256, 128>}, {pipeline_mode = #tpu.pipeline_mode<synchronous>, transform_indices = @transform_2, window_bounds = array<i64: 1, 128>}, {pipeline_mode = #tpu.pipeline_mode<synchronous>, transform_indices = @transform_3, window_bounds = array<i64: 3, 4>}, {pipeline_mode = #tpu.pipeline_mode<synchronous>, transform_indices = @transform_4, window_bounds = array<i64: 1, 4>}, {transform_indices = @transform_5, window_bounds = array<i64: 8, 4>}]} {
    %c0 = arith.constant 0 : index
    %c0_0 = arith.constant 0 : index
    %0 = vector.load %arg1[%c0, %c0_0] : memref<8x256xf32, #tpu.memory_space<vmem>>, vector<8x256xf32>
    %c0_1 = arith.constant 0 : index
    %c0_2 = arith.constant 0 : index
    %1 = vector.load %arg2[%c0_1, %c0_2] : memref<256x128xf32, #tpu.memory_space<vmem>>, vector<256x128xf32>
    %cst = arith.constant dense<0.000000e+00> : vector<8x128xf32>
    %2 = tpu.matmul %0, %1, %cst {dimension_numbers = #tpu.dot_dimension_numbers<[1], [0], [0], [1], [0, 0, 1, 1], [], []>} : vector<8x256xf32>, vector<256x128xf32>, vector<8x128xf32> -> vector<8x128xf32>
    %c0_3 = arith.constant 0 : index
    %c0_4 = arith.constant 0 : index
    %3 = vector.load %arg3[%c0_3, %c0_4] : memref<1x128xf32, #tpu.memory_space<vmem>>, vector<1x128xf32>
    %4 = vector.broadcast %3 : vector<1x128xf32> to vector<8x128xf32>
    %5 = arith.addf %2, %4 : vector<8x128xf32>
    %cst_5 = arith.constant 0.000000e+00 : f32
    %6 = vector.broadcast %cst_5 : f32 to vector<8x128xf32>
    %7 = arith.maximumf %5, %6 : vector<8x128xf32>
    %8 = tpu.iota {dimensions = array<i32: 1>} : vector<1x128xi32>
    %c0_i32 = arith.constant 0 : i32
    %9 = vector.broadcast %c0_i32 : i32 to vector<1x128xi32>
    %10 = arith.cmpi sge, %8, %9 : vector<1x128xi32>
    %c6_i32 = arith.constant 6 : i32
    %11 = vector.broadcast %c6_i32 : i32 to vector<1x128xi32>
    %12 = arith.cmpi slt, %8, %11 : vector<1x128xi32>
    %13 = arith.andi %10, %12 : vector<1x128xi1>
    %cst_6 = arith.constant 0.000000e+00 : f32
    %14 = vector.shape_cast %13 : vector<1x128xi1> to vector<1x128xi1>
    %15 = vector.broadcast %14 : vector<1x128xi1> to vector<8x128xi1>
    %16 = vector.broadcast %cst_6 : f32 to vector<8x128xf32>
    %17 = arith.select %15, %7, %16 : vector<8x128xi1>, vector<8x128xf32>
    %cst_7 = arith.constant dense<0xFF800000> : vector<8xf32>
    %18 = vector.multi_reduction <maximumf>, %17, %cst_7 [1] : vector<8x128xf32> to vector<8xf32>
    %19 = vector.shape_cast %18 : vector<8xf32> to vector<8x1xf32>
    %c6_i32_8 = arith.constant 6 : i32
    %20 = vector.broadcast %c6_i32_8 : i32 to vector<1x128xi32>
    %21 = arith.cmpi sge, %8, %20 : vector<1x128xi32>
    %c11_i32 = arith.constant 11 : i32
    %22 = vector.broadcast %c11_i32 : i32 to vector<1x128xi32>
    %23 = arith.cmpi slt, %8, %22 : vector<1x128xi32>
    %24 = arith.andi %21, %23 : vector<1x128xi1>
    %cst_9 = arith.constant 0.000000e+00 : f32
    %25 = vector.shape_cast %24 : vector<1x128xi1> to vector<1x128xi1>
    %26 = vector.broadcast %25 : vector<1x128xi1> to vector<8x128xi1>
    %27 = vector.broadcast %cst_9 : f32 to vector<8x128xf32>
    %28 = arith.select %26, %7, %27 : vector<8x128xi1>, vector<8x128xf32>
    %cst_10 = arith.constant dense<0xFF800000> : vector<8xf32>
    %29 = vector.multi_reduction <maximumf>, %28, %cst_10 [1] : vector<8x128xf32> to vector<8xf32>
    %30 = vector.shape_cast %29 : vector<8xf32> to vector<8x1xf32>
    %c11_i32_11 = arith.constant 11 : i32
    %31 = vector.broadcast %c11_i32_11 : i32 to vector<1x128xi32>
    %32 = arith.cmpi sge, %8, %31 : vector<1x128xi32>
    %c15_i32 = arith.constant 15 : i32
    %33 = vector.broadcast %c15_i32 : i32 to vector<1x128xi32>
    %34 = arith.cmpi slt, %8, %33 : vector<1x128xi32>
    %35 = arith.andi %32, %34 : vector<1x128xi1>
    %cst_12 = arith.constant 0.000000e+00 : f32
    %36 = vector.shape_cast %35 : vector<1x128xi1> to vector<1x128xi1>
    %37 = vector.broadcast %36 : vector<1x128xi1> to vector<8x128xi1>
    %38 = vector.broadcast %cst_12 : f32 to vector<8x128xf32>
    %39 = arith.select %37, %7, %38 : vector<8x128xi1>, vector<8x128xf32>
    %cst_13 = arith.constant dense<0xFF800000> : vector<8xf32>
    %40 = vector.multi_reduction <maximumf>, %39, %cst_13 [1] : vector<8x128xf32> to vector<8xf32>
    %41 = vector.shape_cast %40 : vector<8xf32> to vector<8x1xf32>
    %c0_14 = arith.constant 0 : index
    %c0_15 = arith.constant 0 : index
    %42 = vector.load %arg4[%c0_14, %c0_15] : memref<3x4xf32, #tpu.memory_space<vmem>>, vector<1x4xf32>
    %43 = vector.broadcast %19 : vector<8x1xf32> to vector<8x4xf32>
    %44 = vector.broadcast %42 : vector<1x4xf32> to vector<8x4xf32>
    %45 = arith.mulf %43, %44 : vector<8x4xf32>
    %c1 = arith.constant 1 : index
    %c0_16 = arith.constant 0 : index
    %46 = vector.load %arg4[%c1, %c0_16] : memref<3x4xf32, #tpu.memory_space<vmem>>, vector<1x4xf32>
    %47 = vector.broadcast %30 : vector<8x1xf32> to vector<8x4xf32>
    %48 = vector.broadcast %46 : vector<1x4xf32> to vector<8x4xf32>
    %49 = arith.mulf %47, %48 : vector<8x4xf32>
    %50 = arith.addf %45, %49 : vector<8x4xf32>
    %c2 = arith.constant 2 : index
    %c0_17 = arith.constant 0 : index
    %51 = vector.load %arg4[%c2, %c0_17] : memref<3x4xf32, #tpu.memory_space<vmem>>, vector<1x4xf32>
    %52 = vector.broadcast %41 : vector<8x1xf32> to vector<8x4xf32>
    %53 = vector.broadcast %51 : vector<1x4xf32> to vector<8x4xf32>
    %54 = arith.mulf %52, %53 : vector<8x4xf32>
    %55 = arith.addf %50, %54 : vector<8x4xf32>
    %c0_18 = arith.constant 0 : index
    %c0_19 = arith.constant 0 : index
    %56 = vector.load %arg5[%c0_18, %c0_19] : memref<1x4xf32, #tpu.memory_space<vmem>>, vector<1x4xf32>
    %57 = vector.broadcast %56 : vector<1x4xf32> to vector<8x4xf32>
    %58 = arith.addf %55, %57 : vector<8x4xf32>
    %c0_20 = arith.constant 0 : index
    %c0_21 = arith.constant 0 : index
    %59 = vector.load %arg6[%c0_20, %c0_21] : memref<8x4xf32, #tpu.memory_space<vmem>>, vector<8x4xf32>
    tpu.vector_store %arg6[%c0_20, %c0_21], %58 {strides = array<i32>} : memref<8x4xf32, #tpu.memory_space<vmem>>, vector<8x4xf32>,
    return
  }
  func.func @transform_0(%arg0: i32) -> (i32, i32) {
    %c0_i32 = arith.constant 0 : i32
    %c0_i32_0 = arith.constant 0 : i32
    return %arg0, %c0_i32 : i32, i32
  }
  func.func @transform_1(%arg0: i32) -> (i32, i32) {
    %c0_i32 = arith.constant 0 : i32
    %c0_i32_0 = arith.constant 0 : i32
    %c0_i32_1 = arith.constant 0 : i32
    return %c0_i32, %c0_i32_0 : i32, i32
  }
  func.func @transform_2(%arg0: i32) -> (i32, i32) {
    %c0_i32 = arith.constant 0 : i32
    %c0_i32_0 = arith.constant 0 : i32
    %c0_i32_1 = arith.constant 0 : i32
    return %c0_i32, %c0_i32_0 : i32, i32
  }
  func.func @transform_3(%arg0: i32) -> (i32, i32) {
    %c0_i32 = arith.constant 0 : i32
    %c0_i32_0 = arith.constant 0 : i32
    %c0_i32_1 = arith.constant 0 : i32
    return %c0_i32, %c0_i32_0 : i32, i32
  }
  func.func @transform_4(%arg0: i32) -> (i32, i32) {
    %c0_i32 = arith.constant 0 : i32
    %c0_i32_0 = arith.constant 0 : i32
    %c0_i32_1 = arith.constant 0 : i32
    return %c0_i32, %c0_i32_0 : i32, i32
  }
  func.func @transform_5(%arg0: i32) -> (i32, i32) {
    %c0_i32 = arith.constant 0 : i32
    %c0_i32_0 = arith.constant 0 : i32
    return %arg0, %c0_i32 : i32, i32
  }
}

</mosaic_0001>

<bundles_post_ra>
// kernel: tpu_custom_call.1
= control target key start
LH: loop header
LB: loop body
LE: loop exit
PB: predicated region body
PF: predicated region fallthrough
CT: control target
= control target key end

     0   :  { %10 = vsyncpa [#allocation3], 0  ;;  %s850_s0 = inlined_call_operand.hbm [shape: f32[32,256], index: 0, kind: input, shape index: {}]   ;;  %s851_s1 = inlined_call_operand.hbm [shape: f32[256,128], index: 1, kind: input, shape index: {}]   ;;  %s852_s2 = inlined_call_operand.vmem [shape: f32[1,128], index: 2, kind: input, shape index: {}]   ;;  %s853_s3 = inlined_call_operand.hbm [shape: f32[3,4], index: 3, kind: input, shape index: {}]   ;;  %s854_s4 = inlined_call_operand.vmem [shape: f32[1,4], index: 4, kind: input, shape index: {}]   ;;  %s855_s5 = inlined_call_operand.vmem [shape: f32[32,4], index: 5, kind: output, shape index: {}]  }
   0x1   :  { %12 = vsyncpa [#allocation3 + $0x1], 0 }
   0x2   :  { %13 = vsyncpa [#allocation5], 0  ;;  %s728_s18 = smov 0   ;;  %s730_s19 = smov 0  }
   0x3   :  { %s732_s20 = smov 0   ;;  %s734_s21 = smov 0  }
   0x4 LB: > { %s171_s24 = sshll.u32 %s851_s1, 4  ;;  %s752_s25 = sadd.s32 4294967295, %s692_s21   ;;  %s692_s21 = sphi %s734_s21, %s862_s21   ;;  %s688_s20 = sphi %s732_s20, %s861_s20   ;;  %s684_s19 = sphi %s730_s19, %s860_s19   ;;  %s680_s18 = sphi %s728_s18, %s859_s18   ;;  %s172_s24 = int_to_ptr.hbm [resolvable:$true] %s171_s24 }
   0x5   : > { %p482_p0 = scmp.ge.s32.totalorder %s692_s21, 1  ;;  %p40_p1 = scmp.eq.s32.totalorder %s752_s25, 0 }
   0x6   : > { %p160_p2 = scmp.lt.s32.totalorder %s692_s21, 5  ;;  %s694_s27 = smov [#allocation4]  }
   0x7   : > { %s173_s28 = sshll.u32 %s694_s27, 4  ;;  %s189_s6 = sshll.u32 %s853_s3, 4  ;;  %s174_s28 = int_to_ptr.vmem [resolvable:$true] %s173_s28  ;;  %s190_s6 = int_to_ptr.hbm [resolvable:$true] %s189_s6 }
   0x8   : > { %p757_p3 = pnand %p482_p0, %p160_p2  ;;  %s695_s7 = smov [#allocation6]  }
   0x9   : > { %s191_s8 = sshll.u32 %s695_s7, 4  ;;  %s696_s9 = smov 128   ;;  %s192_s8 = int_to_ptr.vmem [resolvable:$true] %s191_s8 }
   0xa   : > { %p507_p4 = pneg %p757_p3  ;;  %s697_s10 = smov 8  }
   0xb   : > { %s769_s11 = sadd.s32 1, %s692_s21   ;;  %s26_s13 = sadd.s32 1, %s688_s20 }
   0xc   : > { %p508_p5 = pnand %p507_p4, %p40_p1  ;;  %s23_s12 = ssub.s32 %s692_s21, %s769_s11 }
   0xd   : > { %p24_p6 = scmp.eq.s32.totalorder %s23_s12, 0  ;;  %p33_p7 = scmp.ne.s32.totalorder %s688_s20, %s684_s19 }
   0xe   : > { %510 = dma.hbm_to_vmem [thread:$0]  (!%p508_p5), %s172_s24, 4096, %s174_s28, [#allocation5], %s696_s9, %s696_s9, %s697_s10  }
   0xf   : > { %513 = dma.hbm_to_vmem [thread:$0]  (!%p508_p5), %s190_s6, 64, %s192_s8, [#allocation5]  }
  0x10   : > { %p34_p8 = scmp.eq.s32.totalorder %s692_s21, 0  ;;  %p39_p9 = scmp.ne.s32.totalorder %s684_s19, %s680_s18 }
  0x11   : > { %s780_s14 = scalar_select %p24_p6, %s688_s20, %s26_s13  }
  0x12   : > { %p784_p10 = por %p40_p1, %p39_p9  ;;  %p520_p11 = scmp.lt.s32.totalorder %s692_s21, 4 }
  0x13   : > { %s205_s16 = sand.u32 1, %s688_s20   ;;  %s496_s17 = sshll.u32 %s692_s21, 4 }
  0x14   : > { %p35_p12 = por %p34_p8, %p33_p7  ;;  %s486_s22 = sshll.u32 %s205_s16, 4 }
  0x15   : > { %s214_s27 = scalar_lea.hbm %s850_s0, %s496_s17  ;;  %s209_s29 = scalar_lea.vmem [#allocation2], %s486_s22 }
  0x16   : > { %s216_s28 = sshll.u32 %s214_s27, 4  ;;  %s218_s30 = sshll.u32 %s209_s29, 4  ;;  %s217_s28 = int_to_ptr.hbm [resolvable:$true] %s216_s28  ;;  %s219_s30 = int_to_ptr.vmem [resolvable:$true] %s218_s30 }
  0x17   : > { %p794_p13 = pnand %p520_p11, %p35_p12  ;;  %s206_s6 = scalar_lea.sflag [#allocation3], %s205_s16 }
  0x18   : > { %s624_s7 = sshra.s32 %s217_s28, 4  ;;  %s631_s10 = scalar_lea.hbm %s850_s0, 64  ;;  %s625_s7 = int_to_ptr.hbm [resolvable:$true] %s624_s7 }
  0x19   : > { %s626_s21 = scalar_lea.hbm %s625_s7, 16  ;;  %p628_p2 = pneg %p794_p13 }
  0x1a   : > { %p627_p0 = scmp.ne.s32.totalorder %s625_s7, %s626_s21  ;;  %p632_p6 = scmp.lt.s32.totalorder %s625_s7, %s850_s0 }
  0x1b   : > { %p633_p7 = scmp.lt.s32.totalorder %s631_s10, %s626_s21 }
  0x1c   : > { %p629_p4 = pnand %p628_p2, %p627_p0 }
  0x1d   : > { %p634_p8 = por %p633_p7, %p632_p6 }
  0x1e   : > { %p630_p5 = pneg %p629_p4 }
  0x20   : > { %p635_p9 = pnand %p634_p8, %p630_p5 }
  0x22   : > { %638 = shalt.err (!%p635_p9)
}
  0x23   : > { %517 = dma.hbm_to_vmem [thread:$0]  (!%p794_p13), %s217_s28, 256, %s219_s30, %s206_s6  }
  0x24   : > { %227 = sbr.rel (%p757_p3) target bundleno = 342 (0x156), region = 40  ;;  %s229_s16 = sand.u32 (!%p757_p3), 1, %s684_s19  }
  0x25   : > { %s811_s17 = sshll.u32 (!%p757_p3), %s229_s16, 4  ;;  %s230_s22 = scalar_lea.sflag (!%p757_p3), [#allocation3], %s229_s16 }
  0x26   : > { %s233_s23 = scalar_lea.vmem (!%p757_p3), [#allocation2], %s811_s17 }
  0x29   : > { %671 = dma.done.wait (%p784_p10), %s230_s22, 256  }
  0x2a   : > { %673 = vsyncadd (%p784_p10), %s230_s22, 4294967040 }
  0x2b   : > { %675 = dma.done.wait (%p40_p1), [#allocation5], 4160  }
  0x2c   : > { %677 = vsyncadd (%p40_p1), [#allocation5], 4294963136  ;;  %v291_v0 = vld [vmem:[#allocation4 + $0x78] sm:$0xff]  ;;  %v290_v1 = vld [vmem:[#allocation4 + $0x70] sm:$0xff]  ;;  %v353_v34 = vlaneseq  ;;  %p270_p1 = scmp.lt.s32.totalorder %s752_s25, 3  ;;  %vm395_vm7 = vcmask 31744  }
  0x2d   : > { %v307_v2 = vld [vmem:[#allocation4 + $0xf8] sm:$0xff]  ;;  %312 = vmatpush.msra.mxu0 %v291_v0  ;;  %v306_v3 = vld [vmem:[#allocation4 + $0xf0] sm:$0xff]  ;;  %v289_v4 = vld [vmem:[#allocation4 + $0x68] sm:$0xff] }
  0x2e   : > { %332 = vmatpush.msra.mxu1 %v307_v2  ;;  %v305_v5 = vld [vmem:[#allocation4 + $0xe8] sm:$0xff]  ;;  %v288_v6 = vld [vmem:[#allocation4 + $0x60] sm:$0xff]  ;;  %v287_v8 = vld [vmem:[#allocation4 + $0x58] sm:$0xff]  ;;  %v354_v36 = vand.u32 127, %v353_v34  ;;  %s864_s25 = smov (!%p270_p1, %s752_s25), 3 }
  0x2f   : > { %313 = vmatpush.msra.mxu0 %v290_v1  ;;  %v304_v7 = vld [vmem:[#allocation4 + $0xe0] sm:$0xff]  ;;  %v303_v9 = vld [vmem:[#allocation4 + $0xd8] sm:$0xff]  ;;  %v286_v10 = vld [vmem:[#allocation4 + $0x50] sm:$0xff]  ;;  %s493_s24 = sshll.u32 %s864_s25, 3 }
  0x30   : > { %333 = vmatpush.msra.mxu1 %v306_v3  ;;  %v302_v11 = vld [vmem:[#allocation4 + $0xd0] sm:$0xff]  ;;  %v285_v12 = vld [vmem:[#allocation4 + $0x48] sm:$0xff]  ;;  %v284_v14 = vld [vmem:[#allocation4 + $0x40] sm:$0xff]  ;;  %vm371_vm0 = vcmp.ge.s32.totalorder %v354_v36, 11  ;;  %vm372_vm1 = vcmp.lt.s32.totalorder %v354_v36, 15  ;;  %vm356_vm3 = vcmp.lt.s32.totalorder %v354_v36, 6  ;;  %s273_s18 = scalar_lea.vmem %s855_s5, %s493_s24 }
  0x31   : > { %314 = vmatpush.msra.mxu0 %v289_v4  ;;  %v301_v13 = vld [vmem:[#allocation4 + $0xc8] sm:$0xff]  ;;  %v300_v15 = vld [vmem:[#allocation4 + $0xc0] sm:$0xff]  ;;  %v283_v16 = vld [vmem:[#allocation4 + $0x38] sm:$0xff]  ;;  %vm363_vm4 = vcmp.ge.s32.totalorder %v354_v36, 6  ;;  %vm364_vm5 = vcmp.lt.s32.totalorder %v354_v36, 11 }
  0x32   : > { %334 = vmatpush.msra.mxu1 %v305_v5  ;;  %v299_v17 = vld [vmem:[#allocation4 + $0xb8] sm:$0xff]  ;;  %v282_v18 = vld [vmem:[#allocation4 + $0x30] sm:$0xff]  ;;  %v281_v20 = vld [vmem:[#allocation4 + $0x28] sm:$0xff] }
  0x33   : > { %315 = vmatpush.msra.mxu0 %v288_v6  ;;  %v298_v19 = vld [vmem:[#allocation4 + $0xb0] sm:$0xff]  ;;  %v297_v21 = vld [vmem:[#allocation4 + $0xa8] sm:$0xff]  ;;  %v280_v22 = vld [vmem:[#allocation4 + $0x20] sm:$0xff] }
  0x34   : > { %335 = vmatpush.msra.mxu1 %v304_v7  ;;  %v296_v23 = vld [vmem:[#allocation4 + $0xa0] sm:$0xff]  ;;  %v279_v24 = vld [vmem:[#allocation4 + $0x18] sm:$0xff]  ;;  %v278_v26 = vld [vmem:[#allocation4 + $0x10] sm:$0xff] }
  0x35   : > { %316 = vmatpush.msra.mxu0 %v287_v8  ;;  %v295_v25 = vld [vmem:[#allocation4 + $0x98] sm:$0xff]  ;;  %v294_v27 = vld [vmem:[#allocation4 + $0x90] sm:$0xff]  ;;  %v277_v28 = vld [vmem:[#allocation4 + $0x8] sm:$0xff] }
  0x36   : > { %336 = vmatpush.msra.mxu1 %v303_v9  ;;  %v293_v29 = vld [vmem:[#allocation4 + $0x88] sm:$0xff]  ;;  %v276_v30 = vld [vmem:[#allocation4] sm:$0xff]  ;;  %vm373_vm2 = vmand %vm371_vm0, %vm372_vm1 }
  0x37   : > { %317 = vmatpush.msra.mxu0 %v286_v10  ;;  %v292_v31 = vld [vmem:[#allocation4 + $0x80] sm:$0xff]  ;;  %v275_v33 = vld [vmem:[%s233_s23 + $0x8] sm:$0xff]  ;;  %vm365_vm6 = vmand %vm363_vm4, %vm364_vm5 }
  0x38   : > { %337 = vmatpush.msra.mxu1 %v302_v11  ;;  %v274_v32 = vld [vmem:[%s233_s23] sm:$0xff] }
  0x39   : > { %318 = vmatpush.msra.mxu0 %v285_v12  ;;  %v559_v35 = vld [vmem:[%s852_s2] ss:$0 sm:$0xff]  ;;  %v562_v47 = vld [vmem:[#allocation6 + $0x1] ss:$0 sm:$0xff]  ;;  %v560_v48 = vld [vmem:[#allocation6 + $0x2] ss:$0 sm:$0xff] }
  0x3a   : > { %338 = vmatpush.msra.mxu1 %v301_v13  ;;  %v561_v46 = vld [vmem:[#allocation6] ss:$0 sm:$0xff] }
  0x3b   : > { %319 = vmatpush.msra.mxu0 %v284_v14  ;;  %v563_v54 = vld [vmem:[%s854_s4] ss:$0 sm:$0xff] }
  0x3c   : > { %339 = vmatpush.msra.mxu1 %v300_v15 }
  0x3d   : > { %320 = vmatpush.msra.mxu0 %v283_v16 }
  0x3e   : > { %340 = vmatpush.msra.mxu1 %v299_v17 }
  0x3f   : > { %321 = vmatpush.msra.mxu0 %v282_v18 }
  0x40   : > { %341 = vmatpush.msra.mxu1 %v298_v19 }
  0x41   : > { %322 = vmatpush.msra.mxu0 %v281_v20 }
  0x42   : > { %342 = vmatpush.msra.mxu1 %v297_v21 }
  0x43   : > { %323 = vmatpush.msra.mxu0 %v280_v22 }
  0x44   : > { %343 = vmatpush.msra.mxu1 %v296_v23 }
  0x45   : > { %324 = vmatpush.msra.mxu0 %v279_v24 }
  0x46   : > { %344 = vmatpush.msra.mxu1 %v295_v25 }
  0x47   : > { %325 = vmatpush.msra.mxu0 %v278_v26 }
  0x48   : > { %345 = vmatpush.msra.mxu1 %v294_v27 }
  0x49   : > { %326 = vmatpush.msra.mxu0 %v277_v28 }
  0x4a   : > { %346 = vmatpush.msra.mxu1 %v293_v29 }
  0x4b   : > { %327 = vmatpush.msra.mxu0 %v276_v30 }
  0x4c   : > { %347 = vmatpush.msra.mxu1 %v292_v31  ;;  %328 = vmatmul.f32.vlgmr.msra.gmra.mxu0 %v274_v32 }
  0x4d   : > { %348 = vmatmul.f32.vlgmr.msra.gmra.mxu1 %v275_v33 }
  0xc9   : > { %v329_v37 = vpop.f32.mrf.mxu0 }
  0xca   : > { %v349_v38 = vpop.f32.mrf.mxu1  ;;  %v330_v39 = vadd.f32 %v559_v35, %v329_v37 }
  0xcc   : > { %v350_v40 = vadd.f32 %v349_v38, %v330_v39 }
  0xce   : > { %v352_v41 = vmax.f32 %v350_v40, 0.0 }
  0xd0   : > { %v376_v42 = vsel %vm373_vm2, %v352_v41, 0.0  ;;  %v360_v43 = vsel %vm356_vm3, %v352_v41, 0.0  ;;  %v368_v44 = vsel %vm365_vm6, %v352_v41, 0.0 }
  0xd1   : > { %377 = vmax.xlane.f32.xlu1 %v376_v42  ;;  %361 = vmax.xlane.f32.xlu0 %v360_v43 }
  0xd9   : > { %369 = vmax.xlane.f32.xlu0 %v368_v44 }
 0x144   : > { %v362_v45 = vpop.xlane.xlu0 %361  ;;  %v378_v49 = vpop.xlane.xlu1 %377 }
 0x145   : > { %v381_v51 = vmul.f32 %v561_v46, %v362_v45  ;;  %v388_v53 = vmul.f32 %v560_v48, %v378_v49 }
 0x14c   : > { %v370_v50 = vpop.xlane.xlu0 %369 }
 0x14d   : > { %v384_v52 = vmul.f32 %v562_v47, %v370_v50 }
 0x14f   : > { %v385_v55 = vadd.f32 %v384_v52, %v381_v51 }
 0x151   : > { %v389_v56 = vadd.f32 %v388_v53, %v385_v55 }
 0x153   : > { %v394_v57 = vadd.f32 %v563_v54, %v389_v56 }
 0x155   : > { %396 = vst.msk [vmem:[%s273_s18] sm:$0xff] %vm395_vm7, %v394_v57 }
 0x156 PF: > { %p16_p3 = scmp.ge.s32.totalorder %s769_s11, 6   ;;  %s859_s18 = smov %s684_s19 }
 0x157   : > { %s860_s19 = smov %s688_s20  ;;  %s861_s20 = smov %s780_s14 }
 0x158   : > { %s862_s21 = smov %s769_s11  ;;  %18 = sbr.rel (!%p16_p3) target bundleno = 4 (0x4), region = 88 }
 0x15d   :  { %416 = vsyncpa [#allocation3], 1 }
 0x15e   :  { %418 = vsyncpa [#allocation3 + $0x1], 1 }
 0x15f   :  { %419 = vsyncpa [#allocation5], 1 }

</bundles_post_ra>
